<compile_context>
chip_gen: v7x
topology: tpu7x:2x2x1
jax: 0.10.0
libtpu: 0.0.40
codegen_flags: <defaults>
</compile_context>

<pallas_src>
import functools

import jax
import jax.numpy as jnp
from jax.experimental import pallas as pl
from jax.experimental.pallas import tpu as pltpu


# ---------------------------------------------------------------------------
# Backward kernel: o = -lambda_ * g   (pure VPU elementwise, HBM-bound)
# ---------------------------------------------------------------------------
def _neg_scale_kernel(g_ref, o_ref, *, lambda_):
    if lambda_ == 1.0:
        # Special case: pure negate, saves a VPU multiply per vreg.
        o_ref[...] = -g_ref[...]
    else:
        # lambda_ baked in as a static (weak-typed) Python scalar: no SMEM
        # load/broadcast per tile, no dtype upcast for bf16 grads.
        o_ref[...] = g_ref[...] * (-lambda_)


# ---------------------------------------------------------------------------
# Backward wrapper: flatten to a lane-dense 2-D slab, tile over rows.
# ---------------------------------------------------------------------------
_COLS = 1024        # slab width: 8 vregs of 128 lanes -> unmasked lane-dense stores
_TILE_ROWS = 512    # (512, 1024) f32 tile = 2 MiB/buffer; with 2x double-buffered
                    # in + out buffers (~8 MiB) this fits the default scoped VMEM
                    # on v5e (16 MiB), v6e (32 MiB) and v7x (32 MiB / 64 MiB phys).


def _pallas_neg_scale(g, lambda_):
    orig_shape = g.shape
    n = g.size

    # Layout plumbing only: reshape/pad a contiguous array into (rows, 1024).
    flat = g.reshape(-1)
    pad = (-n) % _COLS
    if pad:
        flat = jnp.pad(flat, (0, pad))
    rows = (n + pad) // _COLS
    g2 = flat.reshape(rows, _COLS)

    kernel = functools.partial(_neg_scale_kernel, lambda_=float(lambda_))

    if rows <= _TILE_ROWS:
        # Small gradient: one full-array block (full dims are exempt from the
        # (8,128) divisibility rule). Alias in->out so the slab is rewritten
        # in place (no extra HBM output allocation).
        out2 = pl.pallas_call(
            kernel,
            out_shape=jax.ShapeDtypeStruct(g2.shape, g2.dtype),
            in_specs=[pl.BlockSpec(g2.shape, lambda: (0, 0))],
            out_specs=pl.BlockSpec(g2.shape, lambda: (0, 0)),
            input_output_aliases={0: 0},
        )(g2)
    else:
        # Large gradient: 1-D grid over row tiles. (TILE_ROWS, COLS) satisfies
        # the (8,128) constraint; BlockSpec double-buffering hides the DMA
        # behind the trivial VPU work. "parallel" lets v7x shard the grid
        # across both TensorCores (no-op on single-TC v5e/v6e).
        grid = (pl.cdiv(rows, _TILE_ROWS),)
        out2 = pl.pallas_call(
            kernel,
            out_shape=jax.ShapeDtypeStruct(g2.shape, g2.dtype),
            grid=grid,
            in_specs=[pl.BlockSpec((_TILE_ROWS, _COLS), lambda i: (i, 0))],
            out_specs=pl.BlockSpec((_TILE_ROWS, _COLS), lambda i: (i, 0)),
            input_output_aliases={0: 0},
            compiler_params=pltpu.CompilerParams(
                dimension_semantics=("parallel",)),
        )(g2)

    out_flat = out2.reshape(-1)
    if pad:
        out_flat = out_flat[:n]
    return out_flat.reshape(orig_shape)


# ---------------------------------------------------------------------------
# GradientReversalLayer equivalent (lambda_ is a static Python scalar, as in
# the PyTorch module's __init__; distinct lambdas recompile, which is fine
# for a fixed hyperparameter).
# ---------------------------------------------------------------------------
@functools.partial(jax.custom_vjp, nondiff_argnums=(1,))
def gradient_reversal(x, lambda_=1.0):
    # Forward is a true no-op, matching PyTorch's zero-copy x.view_as(x).
    return x


def _grl_fwd(x, lambda_):
    return x, None


def _grl_bwd(lambda_, _, g):
    return (_pallas_neg_scale(g, lambda_),)


gradient_reversal.defvjp(_grl_fwd, _grl_bwd)


class GradientReversalLayer:
    """JAX/Pallas equivalent of the PyTorch GradientReversalLayer."""

    def __init__(self, lambda_=1.0):
        self.lambda_ = float(lambda_)

    def __call__(self, x):
        return gradient_reversal(x, self.lambda_)


# ---------------------------------------------------------------------------
# Demo / smoke test
# ---------------------------------------------------------------------------
if __name__ == "__main__":
    key = jax.random.PRNGKey(0)
    # layout: NCHW  (batch=2, channels=4, H=W=16)
    x = jax.random.normal(key, (2, 4, 16, 16), dtype=jnp.float32)

    layer = GradientReversalLayer(lambda_=1.0)

    # Forward: identity (zero-copy).
    y = layer(x)
    y = jax.block_until_ready(y)
    assert y.shape == x.shape and y.dtype == x.dtype
    assert bool(jnp.allclose(y, x)), "forward of GRL must be identity"

    # Backward: d/dx sum(GRL(x)) == -lambda_ * ones_like(x)
    grad = jax.grad(lambda v: jnp.sum(layer(v)))(x)
    grad = jax.block_until_ready(grad)
    assert bool(jnp.allclose(grad, -layer.lambda_ * jnp.ones_like(x))), \
        "backward of GRL must be -lambda * grad_out"

    # Second check: lambda != 1 and a size that is NOT a multiple of 1024
    # (exercises the pad/unpad path and the multiply branch).
    x2 = jax.random.normal(jax.random.PRNGKey(1), (2, 4, 16, 15), dtype=jnp.float32)
    layer2 = GradientReversalLayer(lambda_=0.5)
    grad2 = jax.grad(lambda v: jnp.sum(layer2(v) * 3.0))(x2)
    grad2 = jax.block_until_ready(grad2)
    assert grad2.shape == x2.shape and grad2.dtype == x2.dtype
    assert bool(jnp.allclose(grad2, -0.5 * 3.0 * jnp.ones_like(x2))), \
        "backward of GRL must be -lambda * grad_out (lambda=0.5)"

    print("KERNEL_OK")
</pallas_src>

<mosaic_0001>
module attributes {stable_mosaic.version = 11 : i64} {
  func.func @_neg_scale_kernel(%arg0: memref<2x1024xf32, #tpu.memory_space<vmem>>, %arg1: memref<2x1024xf32, #tpu.memory_space<vmem>>) attributes {dimension_semantics = [], scalar_prefetch = 0 : i64, scratch_operands = 0 : i64, tpu.core_type = #tpu.core_type<tc>} {
    %c0 = arith.constant 0 : index
    %c0_0 = arith.constant 0 : index
    %0 = vector.load %arg0[%c0, %c0_0] : memref<2x1024xf32, #tpu.memory_space<vmem>>, vector<2x1024xf32>
    %cst = arith.constant 0.000000e+00 : f32
    %1 = vector.broadcast %cst : f32 to vector<2x1024xf32>
    %2 = arith.subf %1, %0 : vector<2x1024xf32>
    %c0_1 = arith.constant 0 : index
    %c0_2 = arith.constant 0 : index
    %3 = vector.load %arg1[%c0_1, %c0_2] : memref<2x1024xf32, #tpu.memory_space<vmem>>, vector<2x1024xf32>
    tpu.vector_store %arg1[%c0_1, %c0_2], %2 {strides = array<i32>} : memref<2x1024xf32, #tpu.memory_space<vmem>>, vector<2x1024xf32>,
    return
  }
}

</mosaic_0001>

<bundles_post_ra>
// kernel: tpu_custom_call.1
= control target key start
LH: loop header
LB: loop body
LE: loop exit
PB: predicated region body
PF: predicated region fallthrough
CT: control target
= control target key end

     0   :  { %6 = vsyncpa [#allocation3], 0  ;;  %s128_s0 = inlined_call_operand.hbm [shape: f32[2,1024], index: 0, kind: input, shape index: {}, may-alias: {0,1}]   ;;  %s129_s1 = inlined_call_operand.hbm [shape: f32[2,1024], index: 1, kind: output, shape index: {}, may-alias: {0,1}]  }
   0x1   :  { %7 = vsyncpa [#allocation4], 0  ;;  %s92_s6 = smov [#allocation2]   ;;  %s44_s10 = scalar_lea.hbm %s128_s0, 256 }
   0x2   :  { %s14_s7 = sshll.u32 %s92_s6, 4  ;;  %p45_p0 = scmp.ne.s32.totalorder %s128_s0, %s44_s10  ;;  %s15_s7 = int_to_ptr.vmem [resolvable:$true] %s14_s7 }
   0x3   :  { %p48_p1 = scmp.lt.u32.totalorder %s44_s10, %s128_s0 }
   0x5   :  { %p50_p2 = pnand %p48_p1, %p45_p0 }
   0x7   :  { %53 = shalt.err (!%p50_p2)
}
   0x8   :  { %s54_s15 = scalar_lea.vmem %s15_s7, 256  ;;  %p59_p4 = scmp.lt.s32.totalorder %s15_s7, %s15_s7 }
   0x9   :  { %p55_p3 = scmp.ne.s32.totalorder %s15_s7, %s54_s15  ;;  %p60_p5 = scmp.lt.s32.totalorder %s54_s15, %s54_s15 }
   0xb   :  { %p61_p6 = por %p60_p5, %p59_p4 }
   0xd   :  { %p62_p7 = pnand %p61_p6, %p55_p3 }
   0xf   :  { %65 = shalt.err (!%p62_p7)
}
  0x10   :  { %17 = dma.hbm_to_vmem [thread:$0]  %s128_s0, 256, %s15_s7, [#allocation3]  }
  0x11   :  { %88 = dma.done.wait [#allocation3], 256  }
  0x12   :  { %89 = vsyncadd [#allocation3], 4294967040  ;;  %s93_s18 = smov [#allocation5]   ;;  %v21_v0 = vld [vmem:[#allocation2] sm:$0xff]  ;;  %v22_v1 = vld [vmem:[#allocation2 + $0x8] sm:$0xff] }
  0x13   :  { %s33_s19 = sshll.u32 %s93_s18, 4  ;;  %v23_v2 = vsub.f32 0.0, %v21_v0  ;;  %v24_v3 = vsub.f32 0.0, %v22_v1  ;;  %s34_s19 = int_to_ptr.vmem [resolvable:$true] %s33_s19 }
  0x14   :  { %s66_s20 = scalar_lea.vmem %s34_s19, 256  ;;  %p71_p9 = scmp.lt.s32.totalorder %s34_s19, %s34_s19 }
  0x15   :  { %25 = vst [vmem:[#allocation5] sm:$0xff] %v23_v2  ;;  %26 = vst [vmem:[#allocation5 + $0x8] sm:$0xff] %v24_v3  ;;  %p67_p8 = scmp.ne.s32.totalorder %s34_s19, %s66_s20  ;;  %p72_p10 = scmp.lt.s32.totalorder %s66_s20, %s66_s20 }
  0x17   :  { %p73_p11 = por %p72_p10, %p71_p9 }
  0x19   :  { %p74_p12 = pnand %p73_p11, %p67_p8 }
  0x1b   :  { %77 = shalt.err (!%p74_p12)
}
  0x1c   :  { %s78_s22 = scalar_lea.hbm %s129_s1, 256 }
  0x1d   :  { %p79_p13 = scmp.ne.s32.totalorder %s129_s1, %s78_s22  ;;  %p82_p0 = scmp.lt.u32.totalorder %s78_s22, %s129_s1 }
  0x1f   :  { %p84_p1 = pnand %p82_p0, %p79_p13 }
  0x21   :  { %87 = shalt.err (!%p84_p1)
}
  0x22   :  { %36 = dma.vmem_to_hbm [thread:$0]  %s34_s19, 256, %s129_s1, [#allocation4]  }
  0x23   :  { %90 = dma.done.wait [#allocation4], 256  }
  0x24   :  { %91 = vsyncadd [#allocation4], 4294967040 }
  0x25   :  { %40 = vsyncpa [#allocation3], 1 }
  0x26   :  { %41 = vsyncpa [#allocation4], 1 }

</bundles_post_ra>
